<compile_context>
chip_gen: v7x
topology: tpu7x:2x2x1
jax: 0.10.0
libtpu: 0.0.40
codegen_flags: <defaults>
</compile_context>

<pallas_src>
import math

import jax
import jax.numpy as jnp
from jax.experimental import pallas as pl
from jax.experimental.pallas import tpu as pltpu


def _round_up(x, m):
    return ((x + m - 1) // m) * m


def _pad_axis(x, target, axis):
    cur = x.shape[axis]
    if cur == target:
        return x
    pads = [(0, 0)] * x.ndim
    pads[axis] = (0, target - cur)
    return jnp.pad(x, pads)


# -----------------------------------------------------------------------------
# Kernel 1: single-shot  out = relu(x @ w + b)   (full M, full K, full N block)
# Used for both conv layers after im2col.  Whole problem fits in VMEM, so there
# is no K loop and no accumulator scratch.
# -----------------------------------------------------------------------------
def _matmul_bias_relu_kernel(x_ref, w_ref, b_ref, o_ref):
    acc = jnp.dot(x_ref[...], w_ref[...], preferred_element_type=jnp.float32)
    o_ref[...] = jnp.maximum(acc + b_ref[...], 0.0).astype(o_ref.dtype)


def matmul_bias_relu(x, w, b2d):
    """relu(x @ w + b).  x: (M, K); w: (Kp, N) pre-padded (Kp = roundup(K, 8));
    b2d: (1, N).  Only the activation is padded here (cheap, per call)."""
    M, K = x.shape
    Kp, N = w.shape
    Mp = _round_up(M, 8)
    xp = _pad_axis(_pad_axis(x, Mp, 0), Kp, 1)

    out = pl.pallas_call(
        _matmul_bias_relu_kernel,
        out_shape=jax.ShapeDtypeStruct((Mp, N), jnp.float32),
        grid_spec=pltpu.PrefetchScalarGridSpec(
            num_scalar_prefetch=0,
            grid=(1,),
            in_specs=[
                pl.BlockSpec((Mp, Kp), lambda i: (0, 0)),
                pl.BlockSpec((Kp, N), lambda i: (0, 0)),
                pl.BlockSpec((1, N), lambda i: (0, 0)),
            ],
            out_specs=pl.BlockSpec((Mp, N), lambda i: (0, 0)),
        ),
        compiler_params=pltpu.CompilerParams(
            dimension_semantics=("arbitrary",)
        ),
    )(xp, w, b2d)
    return out[:M, :]


# -----------------------------------------------------------------------------
# Kernel 2: fused FC head:  out = relu(flat @ W1 + b1) @ w2 + b2
# Grid iterates over K tiles of W1 (weight streaming is the HBM bottleneck);
# the FC2 (512 -> 1) product is done in the epilogue of the last K step as an
# elementwise mul + lane reduction (no separate N=1 kernel launch).
# -----------------------------------------------------------------------------
def _fc_head_kernel(x_ref, w1_ref, b1_ref, w2_ref, b2_ref, o_ref, acc_ref):
    k = pl.program_id(0)

    @pl.when(k == 0)
    def _():
        acc_ref[...] = jnp.zeros_like(acc_ref)

    acc_ref[...] += jnp.dot(x_ref[...], w1_ref[...],
                            preferred_element_type=jnp.float32)

    @pl.when(k == pl.num_programs(0) - 1)
    def _():
        h = jnp.maximum(acc_ref[...] + b1_ref[...], 0.0)          # (Mp, 512)
        out = jnp.sum(h * w2_ref[...], axis=1, keepdims=True)     # (Mp, 1)
        o_ref[...] = (out + b2_ref[...]).astype(o_ref.dtype)


def _pick_tk(K, cap=2048):
    """Largest multiple of 128 that divides K and is <= cap (lane-aligned,
    VMEM-safe on all of v5e/v6e/v7x at the default scoped-VMEM limit)."""
    best = 0
    d = 128
    while d <= min(K, cap):
        if K % d == 0:
            best = d
        d += 128
    return best


def fc_head(flat, w1_t, b1_2d, w2_row, b2_2d):
    """flat: (M, K); w1_t: (K, N) pre-transposed; b1_2d: (1, N);
    w2_row: (1, N); b2_2d: (1, 1)."""
    M, K = flat.shape
    K2, N = w1_t.shape
    assert K == K2
    tk = _pick_tk(K)
    assert tk > 0, "K must have a multiple-of-128 divisor"
    Mp = _round_up(M, 8)
    xp = _pad_axis(flat, Mp, 0)

    out = pl.pallas_call(
        _fc_head_kernel,
        out_shape=jax.ShapeDtypeStruct((Mp, 1), jnp.float32),
        grid_spec=pltpu.PrefetchScalarGridSpec(
            num_scalar_prefetch=0,
            grid=(K // tk,),
            in_specs=[
                pl.BlockSpec((Mp, tk), lambda k: (0, k)),
                pl.BlockSpec((tk, N), lambda k: (k, 0)),
                pl.BlockSpec((1, N), lambda k: (0, 0)),
                pl.BlockSpec((1, N), lambda k: (0, 0)),
                pl.BlockSpec((1, 1), lambda k: (0, 0)),
            ],
            out_specs=pl.BlockSpec((Mp, 1), lambda k: (0, 0)),
            scratch_shapes=[pltpu.VMEM((Mp, N), jnp.float32)],
        ),
        compiler_params=pltpu.CompilerParams(
            dimension_semantics=("arbitrary",)
        ),
    )(xp, w1_t, b1_2d, w2_row, b2_2d)
    return out[:M, :]


# -----------------------------------------------------------------------------
# One-time parameter preparation (PyTorch layout -> kernel-ready matrices).
# -----------------------------------------------------------------------------
def prepare_params(params, H=9, W=10):
    w1, b1, w2, b2, wf1, bf1, wf2, bf2 = params

    def conv_w_mat(w_oihw):
        # (O, I, kh, kw) -> (kh, kw, I, O) -> (kh*kw*I, O); matches im2col tap
        # order (kh, kw) with channels contiguous per tap.  Pad K to mult of 8.
        O, I, KH, KW = w_oihw.shape
        m = jnp.transpose(w_oihw, (2, 3, 1, 0)).reshape(KH * KW * I, O)
        return _pad_axis(m, _round_up(KH * KW * I, 8), 0)

    w1m = conv_w_mat(w1)                       # (240, 64)
    w2m = conv_w_mat(w2)                       # (576, 128)
    b1_2d = b1.reshape(1, -1)
    b2_2d = b2.reshape(1, -1)

    # fc1 weight: PyTorch columns follow the NCHW flatten order (c, h, w).
    # Reorder to NHWC (h, w, c) so the conv output needs no runtime transpose,
    # then pre-transpose once to (K, N).
    N1, Kfc = wf1.shape
    C = w2.shape[0]
    assert Kfc == C * H * W
    wf1_nhwc = jnp.transpose(wf1.reshape(N1, C, H, W),
                             (0, 2, 3, 1)).reshape(N1, Kfc)
    wf1_t = jnp.transpose(wf1_nhwc)            # (11520, 512)

    bf1_2d = bf1.reshape(1, -1)                # (1, 512)
    wf2_row = wf2.reshape(1, -1)               # (1, 512)
    bf2_2d = bf2.reshape(1, 1)                 # (1, 1)
    return (w1m, b1_2d, w2m, b2_2d, wf1_t, bf1_2d, wf2_row, bf2_2d)


# -----------------------------------------------------------------------------
# Conv2d (3x3, stride 1, pad 1) + ReLU via im2col + Pallas matmul
# -----------------------------------------------------------------------------
def conv3x3_relu(x_nhwc, w_mat, b_2d):
    B, H, W, Cin = x_nhwc.shape
    Cout = w_mat.shape[1]
    xp = jnp.pad(x_nhwc, ((0, 0), (1, 1), (1, 1), (0, 0)))
    # im2col: tap order (kh, kw), channel-contiguous per tap.
    patches = [xp[:, kh:kh + H, kw:kw + W, :] for kh in range(3) for kw in range(3)]
    cols = jnp.concatenate(patches, axis=-1).reshape(B * H * W, 9 * Cin)
    # TODO(synk): fuse im2col into the Pallas kernel (whole activation fits VMEM).
    y = matmul_bias_relu(cols, w_mat, b_2d)
    return y.reshape(B, H, W, Cout)


# -----------------------------------------------------------------------------
# Full CriticNN forward (prepared params)
# -----------------------------------------------------------------------------
def critic_forward(x_nchw, prepared):
    w1m, b1_2d, w2m, b2_2d, wf1_t, bf1_2d, wf2_row, bf2_2d = prepared
    x = jnp.transpose(x_nchw, (0, 2, 3, 1))          # NCHW -> NHWC
    x = conv3x3_relu(x, w1m, b1_2d)                  # (B, 9, 10, 64)
    x = conv3x3_relu(x, w2m, b2_2d)                  # (B, 9, 10, 128)
    B = x.shape[0]
    flat = x.reshape(B, -1)                          # NHWC flatten (fc1 cols pre-reordered)
    return fc_head(flat, wf1_t, bf1_2d, wf2_row, bf2_2d)   # (B, 1)


# -----------------------------------------------------------------------------
# Pure-JAX reference (for correctness check; uses original PyTorch-layout params)
# -----------------------------------------------------------------------------
def reference_forward(x_nchw, params):
    w1, b1, w2, b2, wf1, bf1, wf2, bf2 = params
    dn = ("NCHW", "OIHW", "NCHW")
    y = jax.lax.conv_general_dilated(x_nchw, w1, (1, 1), "SAME",
                                     dimension_numbers=dn)
    y = jax.nn.relu(y + b1[None, :, None, None])
    y = jax.lax.conv_general_dilated(y, w2, (1, 1), "SAME",
                                     dimension_numbers=dn)
    y = jax.nn.relu(y + b2[None, :, None, None])
    flat = y.reshape(y.shape[0], -1)
    h = jax.nn.relu(flat @ wf1.T + bf1)
    return h @ wf2.T + bf2


if __name__ == "__main__":
    key = jax.random.PRNGKey(0)
    B, Cin, H, W = 2, 26, 9, 10      # fc1 expects 128*9*10 -> spatial is 9x10
    keys = jax.random.split(key, 9)

    def uinit(k, shape, fan_in):
        bound = 1.0 / math.sqrt(fan_in)
        return jax.random.uniform(k, shape, jnp.float32, -bound, bound)

    x = jax.random.normal(keys[0], (B, Cin, H, W), jnp.float32)

    w1 = uinit(keys[1], (64, 26, 3, 3), 26 * 9)
    b1 = uinit(keys[2], (64,), 26 * 9)
    w2 = uinit(keys[3], (128, 64, 3, 3), 64 * 9)
    b2 = uinit(keys[4], (128,), 64 * 9)
    wf1 = uinit(keys[5], (512, 128 * 9 * 10), 128 * 9 * 10)
    bf1 = uinit(keys[6], (512,), 128 * 9 * 10)
    wf2 = uinit(keys[7], (1, 512), 512)
    bf2 = uinit(keys[8], (1,), 512)

    params = (w1, b1, w2, b2, wf1, bf1, wf2, bf2)
    prepared = jax.block_until_ready(prepare_params(params, H=H, W=W))

    out = jax.block_until_ready(critic_forward(x, prepared))
    assert out.shape == (B, 1), out.shape

    ref = jax.block_until_ready(reference_forward(x, params))
    assert jnp.allclose(out, ref, rtol=1e-3, atol=1e-3), (
        "mismatch", float(jnp.max(jnp.abs(out - ref))))

    print("KERNEL_OK")
</pallas_src>

<mosaic_0001>
module attributes {stable_mosaic.version = 11 : i64} {
  func.func @_matmul_bias_relu_kernel(%arg0: i32, %arg1: memref<184x240xf32, #tpu.memory_space<vmem>>, %arg2: memref<240x64xf32, #tpu.memory_space<vmem>>, %arg3: memref<1x64xf32, #tpu.memory_space<vmem>>, %arg4: memref<184x64xf32, #tpu.memory_space<vmem>>) attributes {dimension_semantics = [#tpu.dimension_semantics<arbitrary>], iteration_bounds = array<i64: 1>, scalar_prefetch = 0 : i64, scratch_operands = 0 : i64, tpu.core_type = #tpu.core_type<tc>, window_params = [{pipeline_mode = #tpu.pipeline_mode<synchronous>, transform_indices = @transform_0, window_bounds = array<i64: 184, 240>}, {pipeline_mode = #tpu.pipeline_mode<synchronous>, transform_indices = @transform_1, window_bounds = array<i64: 240, 64>}, {pipeline_mode = #tpu.pipeline_mode<synchronous>, transform_indices = @transform_2, window_bounds = array<i64: 1, 64>}, {pipeline_mode = #tpu.pipeline_mode<synchronous>, transform_indices = @transform_3, window_bounds = array<i64: 184, 64>}]} {
    %c0 = arith.constant 0 : index
    %c0_0 = arith.constant 0 : index
    %0 = vector.load %arg1[%c0, %c0_0] : memref<184x240xf32, #tpu.memory_space<vmem>>, vector<184x240xf32>
    %c0_1 = arith.constant 0 : index
    %c0_2 = arith.constant 0 : index
    %1 = vector.load %arg2[%c0_1, %c0_2] : memref<240x64xf32, #tpu.memory_space<vmem>>, vector<240x64xf32>
    %cst = arith.constant dense<0.000000e+00> : vector<184x64xf32>
    %2 = tpu.matmul %0, %1, %cst {dimension_numbers = #tpu.dot_dimension_numbers<[1], [0], [0], [1], [0, 0, 1, 1], [], []>} : vector<184x240xf32>, vector<240x64xf32>, vector<184x64xf32> -> vector<184x64xf32>
    %c0_3 = arith.constant 0 : index
    %c0_4 = arith.constant 0 : index
    %3 = vector.load %arg3[%c0_3, %c0_4] : memref<1x64xf32, #tpu.memory_space<vmem>>, vector<1x64xf32>
    %4 = vector.broadcast %3 : vector<1x64xf32> to vector<184x64xf32>
    %5 = arith.addf %2, %4 : vector<184x64xf32>
    %cst_5 = arith.constant 0.000000e+00 : f32
    %6 = vector.broadcast %cst_5 : f32 to vector<184x64xf32>
    %7 = arith.maximumf %5, %6 : vector<184x64xf32>
    %c0_6 = arith.constant 0 : index
    %c0_7 = arith.constant 0 : index
    %8 = vector.load %arg4[%c0_6, %c0_7] : memref<184x64xf32, #tpu.memory_space<vmem>>, vector<184x64xf32>
    tpu.vector_store %arg4[%c0_6, %c0_7], %7 {strides = array<i32>} : memref<184x64xf32, #tpu.memory_space<vmem>>, vector<184x64xf32>,
    return
  }
  func.func @transform_0(%arg0: i32) -> (i32, i32) {
    %c0_i32 = arith.constant 0 : i32
    %c0_i32_0 = arith.constant 0 : i32
    %c0_i32_1 = arith.constant 0 : i32
    return %c0_i32, %c0_i32_0 : i32, i32
  }
  func.func @transform_1(%arg0: i32) -> (i32, i32) {
    %c0_i32 = arith.constant 0 : i32
    %c0_i32_0 = arith.constant 0 : i32
    %c0_i32_1 = arith.constant 0 : i32
    return %c0_i32, %c0_i32_0 : i32, i32
  }
  func.func @transform_2(%arg0: i32) -> (i32, i32) {
    %c0_i32 = arith.constant 0 : i32
    %c0_i32_0 = arith.constant 0 : i32
    %c0_i32_1 = arith.constant 0 : i32
    return %c0_i32, %c0_i32_0 : i32, i32
  }
  func.func @transform_3(%arg0: i32) -> (i32, i32) {
    %c0_i32 = arith.constant 0 : i32
    %c0_i32_0 = arith.constant 0 : i32
    %c0_i32_1 = arith.constant 0 : i32
    return %c0_i32, %c0_i32_0 : i32, i32
  }
}

</mosaic_0001>

<bundles_post_ra>
// kernel: tpu_custom_call.1
= control target key start
LH: loop header
LB: loop body
LE: loop exit
PB: predicated region body
PF: predicated region fallthrough
CT: control target
= control target key end

     0   :  { %v498_v0 = vmov 0.0|0.0   ;;  %vm97_vm0 = vcmask 916480   ;;  %vm370_vm1 = vcmask 523264   ;;  %s920_s1 = inlined_call_operand.vmem [shape: f32[240,64], index: 1, kind: input, shape index: {}]   ;;  %s921_s0 = inlined_call_operand.vmem [shape: f32[184,240], index: 0, kind: input, shape index: {}]   ;;  %s922_s2 = inlined_call_operand.vmem [shape: f32[1,64], index: 2, kind: input, shape index: {}]   ;;  %s923_s3 = inlined_call_operand.vmem [shape: f32[184,64], index: 3, kind: output, shape index: {}]  }
   0x1   :  { %422 = vmatprep.subr.bf16.mxu0 %v498_v0  ;;  %v60_v1 = vld [vmem:[%s920_s1] sm:$0xff]  ;;  %v61_v2 = vld [vmem:[%s920_s1 + $0x8] sm:$0xff]  ;;  %467 = vmatprep.subr.bf16.mxu1 %v498_v0  ;;  %v62_v3 = vld [vmem:[%s920_s1 + $0x10] sm:$0xff] }
   0x2   :  { %v423_v4 = vpack.c.bf16 %v61_v2, %v60_v1  ;;  %v63_v5 = vld [vmem:[%s920_s1 + $0x18] sm:$0xff]  ;;  %v64_v7 = vld [vmem:[%s920_s1 + $0x20] sm:$0xff]  ;;  %v65_v8 = vld [vmem:[%s920_s1 + $0x28] sm:$0xff] }
   0x3   :  { %v426_v6 = vpack.c.bf16 %v63_v5, %v62_v3  ;;  %v429_v9 = vpack.c.bf16 %v65_v8, %v64_v7  ;;  %v66_v10 = vld [vmem:[%s920_s1 + $0x30] sm:$0xff]  ;;  %v67_v11 = vld [vmem:[%s920_s1 + $0x38] sm:$0xff]  ;;  %v15_v12 = vld [vmem:[%s921_s0 + $0x8] sm:$0xff] }
   0x4   :  { %424 = vmatpush1.bf16.msra.mxu0 %v423_v4  ;;  %482 = vmatpush1.bf16.msra.mxu1 %v423_v4  ;;  %v39_v13 = vld [vmem:[%s921_s0 + $0xc8] sm:$0xff]  ;;  %v432_v14 = vpack.c.bf16 %v67_v11, %v66_v10  ;;  %v68_v15 = vld [vmem:[%s920_s1 + $0x40] sm:$0xff]  ;;  %v70_v18 = vld [vmem:[%s920_s1 + $0x50] sm:$0xff] }
   0x5   :  { %425 = vmatprep.subr.bf16.mxu0 %v498_v0  ;;  %468 = vmatprep.subr.bf16.mxu1 %v498_v0  ;;  %v69_v16 = vld [vmem:[%s920_s1 + $0x48] sm:$0xff]  ;;  %v71_v19 = vld [vmem:[%s920_s1 + $0x58] sm:$0xff]  ;;  %v72_v21 = vld [vmem:[%s920_s1 + $0x60] sm:$0xff] }
   0x6   :  { %399 = vmatprep.mubr.msk.f32.mxu0 %vm97_vm0, %v15_v12  ;;  %411 = vmatprep.mubr.msk.f32.mxu1 %vm97_vm0, %v39_v13  ;;  %v435_v17 = vpack.c.bf16 %v69_v16, %v68_v15  ;;  %v438_v20 = vpack.c.bf16 %v71_v19, %v70_v18  ;;  %v73_v22 = vld [vmem:[%s920_s1 + $0x68] sm:$0xff]  ;;  %v74_v24 = vld [vmem:[%s920_s1 + $0x70] sm:$0xff]  ;;  %v75_v25 = vld [vmem:[%s920_s1 + $0x78] sm:$0xff] }
   0x7   :  { %v441_v23 = vpack.c.bf16 %v73_v22, %v72_v21  ;;  %v444_v26 = vpack.c.bf16 %v75_v25, %v74_v24  ;;  %v76_v27 = vld [vmem:[%s920_s1 + $0x80] sm:$0xff]  ;;  %v77_v28 = vld [vmem:[%s920_s1 + $0x88] sm:$0xff]  ;;  %v78_v30 = vld [vmem:[%s920_s1 + $0x90] sm:$0xff] }
   0x8   :  { %427 = vmatpush1.bf16.msra.mxu0 %v426_v6  ;;  %483 = vmatpush1.bf16.msra.mxu1 %v426_v6  ;;  %v447_v29 = vpack.c.bf16 %v77_v28, %v76_v27  ;;  %v79_v31 = vld [vmem:[%s920_s1 + $0x98] sm:$0xff]  ;;  %v80_v33 = vld [vmem:[%s920_s1 + $0xa0] sm:$0xff]  ;;  %v81_v34 = vld [vmem:[%s920_s1 + $0xa8] sm:$0xff] }
   0x9   :  { %428 = vmatprep.subr.bf16.mxu0 %v498_v0  ;;  %469 = vmatprep.subr.bf16.mxu1 %v498_v0  ;;  %v450_v32 = vpack.c.bf16 %v79_v31, %v78_v30  ;;  %v453_v35 = vpack.c.bf16 %v81_v34, %v80_v33  ;;  %v82_v36 = vld [vmem:[%s920_s1 + $0xb0] sm:$0xff]  ;;  %v83_v37 = vld [vmem:[%s920_s1 + $0xb8] sm:$0xff]  ;;  %v84_v39 = vld [vmem:[%s920_s1 + $0xc0] sm:$0xff] }
   0xa   :  { %v456_v38 = vpack.c.bf16 %v83_v37, %v82_v36  ;;  %v85_v40 = vld [vmem:[%s920_s1 + $0xc8] sm:$0xff]  ;;  %v86_v42 = vld [vmem:[%s920_s1 + $0xd0] sm:$0xff]  ;;  %v87_v43 = vld [vmem:[%s920_s1 + $0xd8] sm:$0xff] }
   0xb   :  { %v459_v41 = vpack.c.bf16 %v85_v40, %v84_v39  ;;  %v462_v44 = vpack.c.bf16 %v87_v43, %v86_v42  ;;  %v88_v45 = vld [vmem:[%s920_s1 + $0xe0] sm:$0xff]  ;;  %v89_v46 = vld [vmem:[%s920_s1 + $0xe8] sm:$0xff]  ;;  %v17_v50 = vld [vmem:[%s921_s0 + $0x18] sm:$0xff] }
   0xc   :  { %430 = vmatpush1.bf16.msra.mxu0 %v429_v9  ;;  %484 = vmatpush1.bf16.msra.mxu1 %v429_v9  ;;  %v465_v47 = vpack.c.bf16 %v89_v46, %v88_v45  ;;  %v14_v48 = vld [vmem:[%s921_s0] sm:$0xff]  ;;  %v41_v51 = vld [vmem:[%s921_s0 + $0xd8] sm:$0xff]  ;;  %v16_v52 = vld [vmem:[%s921_s0 + $0x10] sm:$0xff] }
   0xd   :  { %431 = vmatprep.subr.bf16.mxu0 %v498_v0  ;;  %470 = vmatprep.subr.bf16.mxu1 %v498_v0  ;;  %v38_v49 = vld [vmem:[%s921_s0 + $0xc0] sm:$0xff]  ;;  %v40_v53 = vld [vmem:[%s921_s0 + $0xd0] sm:$0xff]  ;;  %v19_v54 = vld [vmem:[%s921_s0 + $0x28] sm:$0xff] }
   0xe   :  { %v43_v55 = vld [vmem:[%s921_s0 + $0xe8] sm:$0xff]  ;;  %v18_v56 = vld [vmem:[%s921_s0 + $0x20] sm:$0xff]  ;;  %v21_v58 = vld [vmem:[%s921_s0 + $0x38] sm:$0xff] }
   0xf   :  { %v42_v57 = vld [vmem:[%s921_s0 + $0xe0] sm:$0xff]  ;;  %v45_v59 = vld [vmem:[%s921_s0 + $0xf8] sm:$0xff]  ;;  %v20_v60 = vld [vmem:[%s921_s0 + $0x30] sm:$0xff] }
  0x10   :  { %433 = vmatpush1.bf16.msra.mxu0 %v432_v14  ;;  %485 = vmatpush1.bf16.msra.mxu1 %v432_v14  ;;  %v44_v61 = vld [vmem:[%s921_s0 + $0xf0] sm:$0xff]  ;;  %v23_v62 = vld [vmem:[%s921_s0 + $0x48] sm:$0xff]  ;;  %v46_v1 = vld [vmem:[%s921_s0 + $0x100] sm:$0xff] }
  0x11   :  { %434 = vmatprep.subr.bf16.mxu0 %v498_v0  ;;  %471 = vmatprep.subr.bf16.mxu1 %v498_v0  ;;  %v47_v63 = vld [vmem:[%s921_s0 + $0x108] sm:$0xff]  ;;  %v25_v2 = vld [vmem:[%s921_s0 + $0x58] sm:$0xff]  ;;  %v24_v4 = vld [vmem:[%s921_s0 + $0x50] sm:$0xff] }
  0x12   :  { %v49_v3 = vld [vmem:[%s921_s0 + $0x118] sm:$0xff]  ;;  %v48_v5 = vld [vmem:[%s921_s0 + $0x110] sm:$0xff]  ;;  %v27_v6 = vld [vmem:[%s921_s0 + $0x68] sm:$0xff] }
  0x13   :  { %v51_v7 = vld [vmem:[%s921_s0 + $0x128] sm:$0xff]  ;;  %v26_v8 = vld [vmem:[%s921_s0 + $0x60] sm:$0xff]  ;;  %v29_v10 = vld [vmem:[%s921_s0 + $0x78] sm:$0xff] }
  0x14   :  { %436 = vmatpush1.bf16.msra.mxu0 %v435_v17  ;;  %486 = vmatpush1.bf16.msra.mxu1 %v435_v17  ;;  %v50_v9 = vld [vmem:[%s921_s0 + $0x120] sm:$0xff]  ;;  %v53_v11 = vld [vmem:[%s921_s0 + $0x138] sm:$0xff]  ;;  %v28_v12 = vld [vmem:[%s921_s0 + $0x70] sm:$0xff] }
  0x15   :  { %437 = vmatprep.subr.bf16.mxu0 %v498_v0  ;;  %472 = vmatprep.subr.bf16.mxu1 %v498_v0  ;;  %v52_v13 = vld [vmem:[%s921_s0 + $0x130] sm:$0xff]  ;;  %v31_v14 = vld [vmem:[%s921_s0 + $0x88] sm:$0xff]  ;;  %v30_v16 = vld [vmem:[%s921_s0 + $0x80] sm:$0xff] }
  0x16   :  { %v55_v15 = vld [vmem:[%s921_s0 + $0x148] sm:$0xff]  ;;  %v54_v17 = vld [vmem:[%s921_s0 + $0x140] sm:$0xff]  ;;  %v33_v18 = vld [vmem:[%s921_s0 + $0x98] sm:$0xff] }
  0x17   :  { %v57_v19 = vld [vmem:[%s921_s0 + $0x158] sm:$0xff]  ;;  %v56_v21 = vld [vmem:[%s921_s0 + $0x150] sm:$0xff]  ;;  %v35_v22 = vld [vmem:[%s921_s0 + $0xa8] sm:$0xff] }
  0x18   :  { %439 = vmatpush1.bf16.msra.mxu0 %v438_v20  ;;  %487 = vmatpush1.bf16.msra.mxu1 %v438_v20  ;;  %v32_v20 = vld [vmem:[%s921_s0 + $0x90] sm:$0xff]  ;;  %v34_v24 = vld [vmem:[%s921_s0 + $0xa0] sm:$0xff] }
  0x19   :  { %440 = vmatprep.subr.bf16.mxu0 %v498_v0  ;;  %473 = vmatprep.subr.bf16.mxu1 %v498_v0  ;;  %v58_v25 = vld [vmem:[%s921_s0 + $0x160] sm:$0xff]  ;;  %v36_v27 = vld [vmem:[%s921_s0 + $0xb0] sm:$0xff] }
  0x1a   :  { %v803_v28 = vld [vmem:[%s922_s2] ss:$0 sm:$0xff] }
  0x1c   :  { %442 = vmatpush1.bf16.msra.mxu0 %v441_v23  ;;  %488 = vmatpush1.bf16.msra.mxu1 %v441_v23  ;;  %v59_v23 = vld [vmem:[%s921_s0 + $0x168] sm:$0xff] }
  0x1d   :  { %443 = vmatprep.subr.bf16.mxu0 %v498_v0  ;;  %474 = vmatprep.subr.bf16.mxu1 %v498_v0 }
  0x20   :  { %445 = vmatpush1.bf16.msra.mxu0 %v444_v26  ;;  %489 = vmatpush1.bf16.msra.mxu1 %v444_v26  ;;  %v37_v26 = vld [vmem:[%s921_s0 + $0xb8] sm:$0xff] }
  0x21   :  { %446 = vmatprep.subr.bf16.mxu0 %v498_v0  ;;  %475 = vmatprep.subr.bf16.mxu1 %v498_v0 }
  0x24   :  { %448 = vmatpush1.bf16.msra.mxu0 %v447_v29  ;;  %490 = vmatpush1.bf16.msra.mxu1 %v447_v29 }
  0x25   :  { %449 = vmatprep.subr.bf16.mxu0 %v498_v0  ;;  %476 = vmatprep.subr.bf16.mxu1 %v498_v0 }
  0x28   :  { %451 = vmatpush1.bf16.msra.mxu0 %v450_v32  ;;  %491 = vmatpush1.bf16.msra.mxu1 %v450_v32 }
  0x29   :  { %452 = vmatprep.subr.bf16.mxu0 %v498_v0  ;;  %477 = vmatprep.subr.bf16.mxu1 %v498_v0 }
  0x2c   :  { %454 = vmatpush1.bf16.msra.mxu0 %v453_v35  ;;  %492 = vmatpush1.bf16.msra.mxu1 %v453_v35 }
  0x2d   :  { %455 = vmatprep.subr.bf16.mxu0 %v498_v0  ;;  %478 = vmatprep.subr.bf16.mxu1 %v498_v0 }
  0x30   :  { %457 = vmatpush1.bf16.msra.mxu0 %v456_v38  ;;  %493 = vmatpush1.bf16.msra.mxu1 %v456_v38 }
  0x31   :  { %458 = vmatprep.subr.bf16.mxu0 %v498_v0  ;;  %479 = vmatprep.subr.bf16.mxu1 %v498_v0 }
  0x34   :  { %460 = vmatpush1.bf16.msra.mxu0 %v459_v41  ;;  %494 = vmatpush1.bf16.msra.mxu1 %v459_v41 }
  0x35   :  { %461 = vmatprep.subr.bf16.mxu0 %v498_v0  ;;  %480 = vmatprep.subr.bf16.mxu1 %v498_v0 }
  0x38   :  { %463 = vmatpush1.bf16.msra.mxu0 %v462_v44  ;;  %495 = vmatpush1.bf16.msra.mxu1 %v462_v44 }
  0x39   :  { %464 = vmatprep.subr.bf16.mxu0 %v498_v0  ;;  %481 = vmatprep.subr.bf16.mxu1 %v498_v0  ;;  %v22_v0 = vld [vmem:[%s921_s0 + $0x40] sm:$0xff] }
  0x3c   :  { %466 = vmatpush1.bf16.msra.mxu0 %v465_v47  ;;  %496 = vmatpush1.bf16.msra.mxu1 %v465_v47 }
  0x3f   :  { %232 = vmatmul.mubr.f32.vlgmr.msra.gmra.mrb[0].mxu0 %v14_v48  ;;  %292 = vmatmul.mubr.f32.vlgmr.msra.gmra.mrb[0].mxu1 %v38_v49 }
  0x40   :  { %400 = vmatprep.mubr.msk.f32.mxu0 %vm97_vm0, %v17_v50  ;;  %412 = vmatprep.mubr.msk.f32.mxu1 %vm97_vm0, %v41_v51 }
  0x43   :  { %237 = vmatmul.mubr.f32.gmra.mrb[2].mxu0 %v16_v52  ;;  %297 = vmatmul.mubr.f32.gmra.mrb[2].mxu1 %v40_v53 }
  0x44   :  { %401 = vmatprep.mubr.msk.f32.mxu0 %vm97_vm0, %v19_v54  ;;  %413 = vmatprep.mubr.msk.f32.mxu1 %vm97_vm0, %v43_v55 }
  0x47   :  { %242 = vmatmul.mubr.f32.gmra.mrb[4].mxu0 %v18_v56  ;;  %302 = vmatmul.mubr.f32.gmra.mrb[4].mxu1 %v42_v57 }
  0x48   :  { %402 = vmatprep.mubr.msk.f32.mxu0 %vm97_vm0, %v21_v58  ;;  %414 = vmatprep.mubr.msk.f32.mxu1 %vm97_vm0, %v45_v59 }
  0x4b   :  { %247 = vmatmul.mubr.f32.gmra.mrb[6].mxu0 %v20_v60  ;;  %307 = vmatmul.mubr.f32.gmra.mrb[6].mxu1 %v44_v61 }
  0x4c   :  { %403 = vmatprep.mubr.msk.f32.mxu0 %vm97_vm0, %v23_v62  ;;  %415 = vmatprep.mubr.msk.f32.mxu1 %vm97_vm0, %v47_v63 }
  0x4f   :  { %252 = vmatmul.mubr.f32.gmra.mrb[8].mxu0 %v22_v0  ;;  %312 = vmatmul.mubr.f32.gmra.mrb[8].mxu1 %v46_v1 }
  0x50   :  { %404 = vmatprep.mubr.msk.f32.mxu0 %vm97_vm0, %v25_v2  ;;  %416 = vmatprep.mubr.msk.f32.mxu1 %vm97_vm0, %v49_v3 }
  0x53   :  { %257 = vmatmul.mubr.f32.gmra.mrb[10].mxu0 %v24_v4  ;;  %317 = vmatmul.mubr.f32.gmra.mrb[10].mxu1 %v48_v5 }
  0x54   :  { %405 = vmatprep.mubr.msk.f32.mxu0 %vm97_vm0, %v27_v6  ;;  %417 = vmatprep.mubr.msk.f32.mxu1 %vm97_vm0, %v51_v7 }
  0x57   :  { %262 = vmatmul.mubr.f32.gmra.mrb[12].mxu0 %v26_v8  ;;  %322 = vmatmul.mubr.f32.gmra.mrb[12].mxu1 %v50_v9 }
  0x58   :  { %406 = vmatprep.mubr.msk.f32.mxu0 %vm97_vm0, %v29_v10  ;;  %418 = vmatprep.mubr.msk.f32.mxu1 %vm97_vm0, %v53_v11 }
  0x5b   :  { %267 = vmatmul.mubr.f32.gmra.mrb[14].mxu0 %v28_v12  ;;  %327 = vmatmul.mubr.f32.gmra.mrb[14].mxu1 %v52_v13 }
  0x5c   :  { %407 = vmatprep.mubr.msk.f32.mxu0 %vm97_vm0, %v31_v14  ;;  %419 = vmatprep.mubr.msk.f32.mxu1 %vm97_vm0, %v55_v15 }
  0x5f   :  { %272 = vmatmul.mubr.f32.gmra.mrb[16].mxu0 %v30_v16  ;;  %332 = vmatmul.mubr.f32.gmra.mrb[16].mxu1 %v54_v17 }
  0x60   :  { %408 = vmatprep.mubr.msk.f32.mxu0 %vm97_vm0, %v33_v18  ;;  %420 = vmatprep.mubr.msk.f32.mxu1 %vm97_vm0, %v57_v19 }
  0x63   :  { %277 = vmatmul.mubr.f32.gmra.mrb[18].mxu0 %v32_v20  ;;  %337 = vmatmul.mubr.f32.gmra.mrb[18].mxu1 %v56_v21 }
  0x64   :  { %409 = vmatprep.mubr.msk.f32.mxu0 %vm97_vm0, %v35_v22  ;;  %421 = vmatprep.mubr.msk.f32.mxu1 %vm97_vm0, %v59_v23 }
  0x67   :  { %282 = vmatmul.mubr.f32.gmra.mrb[20].mxu0 %v34_v24  ;;  %342 = vmatmul.mubr.f32.gmra.mrb[20].mxu1 %v58_v25 }
  0x68   :  { %410 = vmatprep.mubr.msk.f32.mxu0 %vm97_vm0, %v37_v26 }
  0x6b   :  { %287 = vmatmul.mubr.f32.gmra.mrb[22].mxu0 %v36_v27 }
 0x112   :  { %v233_v29 = vpop.f32.mrb[0].mxu0  ;;  %v293_v30 = vpop.f32.mrb[0].mxu1 }
 0x113   :  { %v234_v31 = vadd.f32 %v803_v28, %v233_v29  ;;  %v235_v32 = vpop.f32.mrb[1].mxu0  ;;  %v294_v33 = vadd.f32 %v803_v28, %v293_v30  ;;  %v295_v34 = vpop.f32.mrb[1].mxu1 }
 0x115   :  { %v347_v35 = vmax.f32 %v234_v31, 0.0  ;;  %v359_v36 = vmax.f32 %v294_v33, 0.0 }
 0x116   :  { %v238_v37 = vpop.f32.mrb[2].mxu0  ;;  %v298_v38 = vpop.f32.mrb[2].mxu1 }
 0x117   :  { %371 = vst.msk [vmem:[%s923_s3] sm:$0xff] %vm370_vm1, %v347_v35  ;;  %383 = vst.msk [vmem:[%s923_s3 + $0x60] sm:$0xff] %vm370_vm1, %v359_v36  ;;  %v239_v39 = vadd.f32 %v803_v28, %v238_v37  ;;  %v240_v40 = vpop.f32.mrb[3].mxu0  ;;  %v299_v41 = vadd.f32 %v803_v28, %v298_v38  ;;  %v300_v42 = vpop.f32.mrb[3].mxu1 }
 0x119   :  { %v348_v43 = vmax.f32 %v239_v39, 0.0  ;;  %v360_v44 = vmax.f32 %v299_v41, 0.0 }
 0x11a   :  { %v243_v45 = vpop.f32.mrb[4].mxu0  ;;  %v303_v46 = vpop.f32.mrb[4].mxu1 }
 0x11b   :  { %372 = vst.msk [vmem:[%s923_s3 + $0x8] sm:$0xff] %vm370_vm1, %v348_v43  ;;  %384 = vst.msk [vmem:[%s923_s3 + $0x68] sm:$0xff] %vm370_vm1, %v360_v44  ;;  %v244_v47 = vadd.f32 %v803_v28, %v243_v45  ;;  %v245_v48 = vpop.f32.mrb[5].mxu0  ;;  %v304_v49 = vadd.f32 %v803_v28, %v303_v46  ;;  %v305_v50 = vpop.f32.mrb[5].mxu1 }
 0x11d   :  { %v349_v51 = vmax.f32 %v244_v47, 0.0  ;;  %v361_v52 = vmax.f32 %v304_v49, 0.0 }
 0x11e   :  { %v248_v53 = vpop.f32.mrb[6].mxu0  ;;  %v308_v54 = vpop.f32.mrb[6].mxu1 }
 0x11f   :  { %373 = vst.msk [vmem:[%s923_s3 + $0x10] sm:$0xff] %vm370_vm1, %v349_v51  ;;  %385 = vst.msk [vmem:[%s923_s3 + $0x70] sm:$0xff] %vm370_vm1, %v361_v52  ;;  %v249_v55 = vadd.f32 %v803_v28, %v248_v53  ;;  %v250_v56 = vpop.f32.mrb[7].mxu0  ;;  %v309_v57 = vadd.f32 %v803_v28, %v308_v54  ;;  %v310_v58 = vpop.f32.mrb[7].mxu1 }
 0x121   :  { %v350_v59 = vmax.f32 %v249_v55, 0.0  ;;  %v362_v60 = vmax.f32 %v309_v57, 0.0 }
 0x122   :  { %v253_v61 = vpop.f32.mrb[8].mxu0  ;;  %v313_v62 = vpop.f32.mrb[8].mxu1 }
 0x123   :  { %374 = vst.msk [vmem:[%s923_s3 + $0x18] sm:$0xff] %vm370_vm1, %v350_v59  ;;  %386 = vst.msk [vmem:[%s923_s3 + $0x78] sm:$0xff] %vm370_vm1, %v362_v60  ;;  %v254_v63 = vadd.f32 %v803_v28, %v253_v61  ;;  %v255_v0 = vpop.f32.mrb[9].mxu0  ;;  %v314_v1 = vadd.f32 %v803_v28, %v313_v62  ;;  %v315_v2 = vpop.f32.mrb[9].mxu1 }
 0x125   :  { %v351_v3 = vmax.f32 %v254_v63, 0.0  ;;  %v363_v4 = vmax.f32 %v314_v1, 0.0 }
 0x126   :  { %v258_v5 = vpop.f32.mrb[10].mxu0  ;;  %v318_v6 = vpop.f32.mrb[10].mxu1 }
 0x127   :  { %375 = vst.msk [vmem:[%s923_s3 + $0x20] sm:$0xff] %vm370_vm1, %v351_v3  ;;  %387 = vst.msk [vmem:[%s923_s3 + $0x80] sm:$0xff] %vm370_vm1, %v363_v4  ;;  %v259_v7 = vadd.f32 %v803_v28, %v258_v5  ;;  %v260_v8 = vpop.f32.mrb[11].mxu0  ;;  %v319_v9 = vadd.f32 %v803_v28, %v318_v6  ;;  %v320_v10 = vpop.f32.mrb[11].mxu1 }
 0x129   :  { %v352_v11 = vmax.f32 %v259_v7, 0.0  ;;  %v364_v12 = vmax.f32 %v319_v9, 0.0 }
 0x12a   :  { %v263_v13 = vpop.f32.mrb[12].mxu0  ;;  %v323_v14 = vpop.f32.mrb[12].mxu1 }
 0x12b   :  { %376 = vst.msk [vmem:[%s923_s3 + $0x28] sm:$0xff] %vm370_vm1, %v352_v11  ;;  %388 = vst.msk [vmem:[%s923_s3 + $0x88] sm:$0xff] %vm370_vm1, %v364_v12  ;;  %v264_v15 = vadd.f32 %v803_v28, %v263_v13  ;;  %v265_v16 = vpop.f32.mrb[13].mxu0  ;;  %v324_v17 = vadd.f32 %v803_v28, %v323_v14  ;;  %v325_v18 = vpop.f32.mrb[13].mxu1 }
 0x12d   :  { %v353_v19 = vmax.f32 %v264_v15, 0.0  ;;  %v365_v20 = vmax.f32 %v324_v17, 0.0 }
 0x12e   :  { %v268_v21 = vpop.f32.mrb[14].mxu0  ;;  %v328_v22 = vpop.f32.mrb[14].mxu1 }
 0x12f   :  { %377 = vst.msk [vmem:[%s923_s3 + $0x30] sm:$0xff] %vm370_vm1, %v353_v19  ;;  %389 = vst.msk [vmem:[%s923_s3 + $0x90] sm:$0xff] %vm370_vm1, %v365_v20  ;;  %v269_v23 = vadd.f32 %v803_v28, %v268_v21  ;;  %v270_v24 = vpop.f32.mrb[15].mxu0  ;;  %v329_v25 = vadd.f32 %v803_v28, %v328_v22  ;;  %v330_v26 = vpop.f32.mrb[15].mxu1 }
 0x131   :  { %v354_v27 = vmax.f32 %v269_v23, 0.0  ;;  %v366_v29 = vmax.f32 %v329_v25, 0.0 }
 0x132   :  { %v273_v30 = vpop.f32.mrb[16].mxu0  ;;  %v333_v31 = vpop.f32.mrb[16].mxu1 }
 0x133   :  { %378 = vst.msk [vmem:[%s923_s3 + $0x38] sm:$0xff] %vm370_vm1, %v354_v27  ;;  %390 = vst.msk [vmem:[%s923_s3 + $0x98] sm:$0xff] %vm370_vm1, %v366_v29  ;;  %v274_v32 = vadd.f32 %v803_v28, %v273_v30  ;;  %v275_v33 = vpop.f32.mrb[17].mxu0  ;;  %v334_v34 = vadd.f32 %v803_v28, %v333_v31  ;;  %v335_v35 = vpop.f32.mrb[17].mxu1 }
 0x135   :  { %v355_v36 = vmax.f32 %v274_v32, 0.0  ;;  %v367_v37 = vmax.f32 %v334_v34, 0.0 }
 0x136   :  { %v278_v38 = vpop.f32.mrb[18].mxu0  ;;  %v338_v39 = vpop.f32.mrb[18].mxu1 }
 0x137   :  { %379 = vst.msk [vmem:[%s923_s3 + $0x40] sm:$0xff] %vm370_vm1, %v355_v36  ;;  %391 = vst.msk [vmem:[%s923_s3 + $0xa0] sm:$0xff] %vm370_vm1, %v367_v37  ;;  %v279_v40 = vadd.f32 %v803_v28, %v278_v38  ;;  %v280_v41 = vpop.f32.mrb[19].mxu0  ;;  %v339_v42 = vadd.f32 %v803_v28, %v338_v39  ;;  %v340_v43 = vpop.f32.mrb[19].mxu1 }
 0x139   :  { %v356_v44 = vmax.f32 %v279_v40, 0.0  ;;  %v368_v45 = vmax.f32 %v339_v42, 0.0 }
 0x13a   :  { %v283_v46 = vpop.f32.mrb[20].mxu0  ;;  %v343_v47 = vpop.f32.mrb[20].mxu1 }
 0x13b   :  { %380 = vst.msk [vmem:[%s923_s3 + $0x48] sm:$0xff] %vm370_vm1, %v356_v44  ;;  %392 = vst.msk [vmem:[%s923_s3 + $0xa8] sm:$0xff] %vm370_vm1, %v368_v45  ;;  %v284_v48 = vadd.f32 %v803_v28, %v283_v46  ;;  %v285_v49 = vpop.f32.mrb[21].mxu0  ;;  %v344_v50 = vadd.f32 %v803_v28, %v343_v47  ;;  %v345_v51 = vpop.f32.mrb[21].mxu1 }
 0x13d   :  { %v357_v52 = vmax.f32 %v284_v48, 0.0  ;;  %v369_v53 = vmax.f32 %v344_v50, 0.0 }
 0x13e   :  { %v288_v54 = vpop.f32.mrb[22].mxu0 }
 0x13f   :  { %381 = vst.msk [vmem:[%s923_s3 + $0x50] sm:$0xff] %vm370_vm1, %v357_v52  ;;  %393 = vst.msk [vmem:[%s923_s3 + $0xb0] sm:$0xff] %vm370_vm1, %v369_v53  ;;  %v289_v55 = vadd.f32 %v803_v28, %v288_v54  ;;  %v290_v56 = vpop.f32.mrb[23].mxu0 }
 0x141   :  { %v358_v57 = vmax.f32 %v289_v55, 0.0 }
 0x143   :  { %382 = vst.msk [vmem:[%s923_s3 + $0x58] sm:$0xff] %vm370_vm1, %v358_v57 }

</bundles_post_ra>
